<compile_context>
chip_gen: v5e
topology: v5e:2x2
jax: 0.10.0
libtpu: 0.0.40
codegen_flags: <defaults>
</compile_context>

<pallas_src>
import functools

import numpy as np
import jax
import jax.numpy as jnp
from jax.experimental import pallas as pl
from jax.experimental.pallas import tpu as pltpu

_LANE = 128
_SUBLANE = 8

# Lazily probed: can this Mosaic toolchain lower the unaligned lane concatenation?
_TILE_CONCAT_OK = None


def _round_up(x, m):
    return ((x + m - 1) // m) * m


# ---------------------------------------------------------------------------
# Kernels
# ---------------------------------------------------------------------------
def _wc_kernel_tile_concat(edge_ref, w_ref, wexp_ref, out_ref, *, mult_out, alpha, pad_cols):
    # edge_ref : (TZ, D)    per-edge irrep components
    # w_ref    : (TZ, W)    per-edge weights (W = U*R or U)
    # wexp_ref : (W, UDP)   constant 0/1 weight-expansion selector (resident in VMEM)
    # out_ref  : (TZ, UDP)  lane-dense flattened output (UDP = round_up(U*D, 128))
    w_exp = jnp.dot(w_ref[...], wexp_ref[...],
                    preferred_element_type=jnp.float32,
                    precision=jax.lax.Precision.HIGHEST)          # one MXU matmul
    e = edge_ref[...].astype(jnp.float32)
    pieces = [e] * mult_out                                       # U-fold lane tiling,
    if pad_cols:                                                  # no MXU push
        pieces.append(jnp.zeros((e.shape[0], pad_cols), dtype=e.dtype))
    e_til = jnp.concatenate(pieces, axis=-1)                      # (TZ, UDP)
    res = e_til * w_exp                                           # VPU
    if alpha != 1.0:
        res = res * jnp.float32(alpha)
    out_ref[...] = res.astype(out_ref.dtype)


def _wc_kernel_tile_mxu(edge_ref, w_ref, wexp_ref, etile_ref, out_ref, *, alpha):
    # Fallback: edge tiling done by a second 0/1 selector matmul (always lowers).
    w_exp = jnp.dot(w_ref[...], wexp_ref[...],
                    preferred_element_type=jnp.float32,
                    precision=jax.lax.Precision.HIGHEST)
    e_til = jnp.dot(edge_ref[...], etile_ref[...],
                    preferred_element_type=jnp.float32,
                    precision=jax.lax.Precision.HIGHEST)
    res = e_til * w_exp
    if alpha != 1.0:
        res = res * jnp.float32(alpha)
    out_ref[...] = res.astype(out_ref.dtype)


# ---------------------------------------------------------------------------
# Constant selector-matrix builders (pure 0/1; alpha is applied in-kernel)
# ---------------------------------------------------------------------------
def _build_weight_expand(irrep_dims, mult_out, out_cols):
    """(U*R, out_cols): E[u*R + r, u*D + slice_r] = 1 (block replication of rtoi)."""
    r = len(irrep_dims)
    d = int(sum(irrep_dims))
    m = np.zeros((mult_out * r, out_cols), dtype=np.float32)
    off = 0
    for r_i, dsz in enumerate(irrep_dims):
        for u_i in range(mult_out):
            m[u_i * r + r_i, u_i * d + off: u_i * d + off + dsz] = 1.0
        off += dsz
    return jnp.asarray(m)


def _build_shared_expand(dim, mult_out, out_cols):
    """(U, out_cols): S[u, u*D:(u+1)*D] = 1 (broadcast one weight per channel)."""
    m = np.zeros((mult_out, out_cols), dtype=np.float32)
    for u_i in range(mult_out):
        m[u_i, u_i * dim:(u_i + 1) * dim] = 1.0
    return jnp.asarray(m)


def _build_edge_tile(dim, mult_out, out_cols):
    """(D, out_cols): T[i, u*D + i] = 1 (only used by the MXU fallback path)."""
    m = np.zeros((dim, out_cols), dtype=np.float32)
    idx = np.arange(dim)
    for u_i in range(mult_out):
        m[idx, u_i * dim + idx] = 1.0
    return jnp.asarray(m)


# ---------------------------------------------------------------------------
# pallas_call wrapper
# ---------------------------------------------------------------------------
def _pick_block_z(z, d, w_cols, udp, itemsize, block_z, vmem_budget_bytes):
    """Clamp the Z tile to the problem size and a double-buffered VMEM budget.

    The 12 MiB default budget keeps the working set safe on every generation
    (v5e ~16 MiB scoped default, v7x 64 MiB physical); raise it (and block_z)
    when sweeping on v6e.  For v7x megacore sharding prefer block sizes that
    give an even number (>=4) of Z blocks on production problem sizes.
    """
    per_row = 2 * (d + w_cols + udp) * itemsize          # in + out, double buffered
    bz = min(block_z, max(vmem_budget_bytes // per_row, _SUBLANE))
    bz = min(bz, _round_up(max(z, 1), _SUBLANE))
    return max(_SUBLANE, (bz // _SUBLANE) * _SUBLANE)


def _run_weighted(edge_attr, weights, wexp_mat, mult_out, dim, alpha, *,
                  block_z=4096, vmem_budget_bytes=12 << 20):
    global _TILE_CONCAT_OK
    z, d = edge_attr.shape
    w_cols = weights.shape[1]
    ud = mult_out * dim
    udp = _round_up(ud, _LANE)          # lane-dense (unmasked vst) output columns
    pad_cols = udp - ud
    assert wexp_mat.shape == (w_cols, udp)
    itemsize = jnp.dtype(edge_attr.dtype).itemsize

    block_z_eff = _pick_block_z(z, d, w_cols, udp, itemsize, block_z, vmem_budget_bytes)
    grid = (pl.cdiv(z, block_z_eff),)   # no Z padding: Pallas clips the last block

    wexp_mat = wexp_mat.astype(edge_attr.dtype)

    vmem_bytes = (2 * block_z_eff * (d + w_cols + udp) + 2 * (w_cols + d) * udp) * itemsize
    compiler_kwargs = dict(dimension_semantics=("parallel",))
    if vmem_bytes > (12 << 20):
        compiler_kwargs["vmem_limit_bytes"] = int(min(vmem_bytes + (4 << 20), 64 << 20))

    common = dict(
        out_shape=jax.ShapeDtypeStruct((z, udp), edge_attr.dtype),
        grid=grid,
        out_specs=pl.BlockSpec((block_z_eff, udp), lambda i: (i, 0)),
        compiler_params=pltpu.CompilerParams(**compiler_kwargs),
    )
    data_specs = [
        pl.BlockSpec((block_z_eff, d), lambda i: (i, 0)),
        pl.BlockSpec((block_z_eff, w_cols), lambda i: (i, 0)),
    ]
    # Constant index_map -> the selector stays resident in VMEM, not re-DMA'd per step.
    wexp_spec = pl.BlockSpec((w_cols, udp), lambda i: (0, 0))

    def _call_concat():
        return pl.pallas_call(
            functools.partial(_wc_kernel_tile_concat, mult_out=mult_out,
                              alpha=float(alpha), pad_cols=pad_cols),
            in_specs=data_specs + [wexp_spec],
            **common,
        )(edge_attr, weights, wexp_mat)

    def _call_mxu():
        etile = _build_edge_tile(dim, mult_out, udp).astype(edge_attr.dtype)
        return pl.pallas_call(
            functools.partial(_wc_kernel_tile_mxu, alpha=float(alpha)),
            in_specs=data_specs + [wexp_spec, pl.BlockSpec((d, udp), lambda i: (0, 0))],
            **common,
        )(edge_attr, weights, wexp_mat, etile)

    if _TILE_CONCAT_OK is None:
        try:
            out_flat = jax.block_until_ready(_call_concat())
            _TILE_CONCAT_OK = True
        except Exception:
            # Older Mosaic: unaligned lane concat not supported -> selector-matmul tiling.
            _TILE_CONCAT_OK = False
            out_flat = _call_mxu()
    elif _TILE_CONCAT_OK:
        out_flat = _call_concat()
    else:
        out_flat = _call_mxu()
    return out_flat, ud, udp


# ---------------------------------------------------------------------------
# Public wrappers (forward-pass equivalents of MakeWeightedChannels.forward)
# ---------------------------------------------------------------------------
def make_weighted_channels(edge_attr, weights_flat, irrep_dims, multiplicity_out,
                           alpha=1.0, *, block_z=4096, vmem_budget_bytes=12 << 20):
    """weight_individual_irreps=True branch."""
    z, d = edge_attr.shape
    r = len(irrep_dims)
    u = multiplicity_out
    assert d == int(sum(irrep_dims))
    assert weights_flat.shape == (z, u * r)
    udp = _round_up(u * d, _LANE)
    wexp = _build_weight_expand(irrep_dims, u, udp)
    out_flat, ud, udp = _run_weighted(edge_attr, weights_flat, wexp, u, d, alpha,
                                      block_z=block_z, vmem_budget_bytes=vmem_budget_bytes)
    if udp != ud:
        out_flat = out_flat[:, :ud]     # only when U*D is not a multiple of 128
    return out_flat.reshape(z, u, d)


def make_shared_channels(edge_attr, weights, alpha=1.0, *, block_z=4096,
                         vmem_budget_bytes=12 << 20):
    """weight_individual_irreps=False branch."""
    z, d = edge_attr.shape
    u = weights.shape[1]
    udp = _round_up(u * d, _LANE)
    wexp = _build_shared_expand(d, u, udp)
    out_flat, ud, udp = _run_weighted(edge_attr, weights, wexp, u, d, alpha,
                                      block_z=block_z, vmem_budget_bytes=vmem_budget_bytes)
    if udp != ud:
        out_flat = out_flat[:, :ud]
    return out_flat.reshape(z, u, d)


# ---------------------------------------------------------------------------
# Pure numpy references (exact, no MXU precision ambiguity)
# ---------------------------------------------------------------------------
def _ref_individual(edge_attr, weights, irrep_dims, u, alpha):
    r = len(irrep_dims)
    comp_to_irrep = np.concatenate([np.full(dsz, i, dtype=np.int64)
                                    for i, dsz in enumerate(irrep_dims)])
    w3 = np.asarray(weights).reshape(len(edge_attr), u, r)
    expanded = alpha * w3[:, :, comp_to_irrep]                     # (Z, U, D)
    return np.asarray(edge_attr)[:, None, :] * expanded


def _ref_shared(edge_attr, weights, alpha):
    return np.asarray(weights)[:, :, None] * (alpha * np.asarray(edge_attr)[:, None, :])


# ---------------------------------------------------------------------------
# Demo / correctness check
# ---------------------------------------------------------------------------
if __name__ == "__main__":
    # irreps_in = "1x0e + 1x1o + 1x2e + 1x3o" -> mul==1 for all, R irreps.
    irrep_dims = (1, 3, 5, 7)          # (2l+1) for l = 0..3
    num_irreps = len(irrep_dims)       # R = 4
    dim = int(sum(irrep_dims))         # D = 16
    multiplicity_out = 8               # U -> U*D = 128 (lane-dense output)
    alpha = 0.5
    num_edges = 20                     # Z not a multiple of 8: exercises the clipped last block

    key = jax.random.PRNGKey(0)
    k_edge, k_w, k_w2, k_w3 = jax.random.split(key, 4)
    edge_attr = jax.random.normal(k_edge, (num_edges, dim), dtype=jnp.float32)
    weights = jax.random.normal(
        k_w, (num_edges, num_irreps * multiplicity_out), dtype=jnp.float32)
    weights_shared = jax.random.normal(
        k_w2, (num_edges, multiplicity_out), dtype=jnp.float32)

    # --- branch 1: weight_individual_irreps = True (single clipped block) ---
    out1 = jax.block_until_ready(
        make_weighted_channels(edge_attr, weights, irrep_dims, multiplicity_out, alpha))
    ref1 = _ref_individual(edge_attr, weights, irrep_dims, multiplicity_out, alpha)
    assert out1.shape == (num_edges, multiplicity_out, dim)
    assert np.allclose(np.asarray(out1), ref1, atol=1e-5, rtol=1e-5), "individual-irreps mismatch"

    # --- same, with several Z blocks and a partial last block (block_z=8 -> 3 blocks) ---
    out1b = jax.block_until_ready(
        make_weighted_channels(edge_attr, weights, irrep_dims, multiplicity_out, alpha,
                               block_z=8))
    assert np.allclose(np.asarray(out1b), ref1, atol=1e-5, rtol=1e-5), "multi-block mismatch"

    # --- branch 2: weight_individual_irreps = False ---
    out2 = jax.block_until_ready(make_shared_channels(edge_attr, weights_shared, alpha))
    ref2 = _ref_shared(edge_attr, weights_shared, alpha)
    assert np.allclose(np.asarray(out2), ref2, atol=1e-5, rtol=1e-5), "shared-channel mismatch"

    # --- U*D not a multiple of 128 (U=5 -> 80 cols, lane-padded to 128 in the kernel) ---
    u_odd = 5
    weights_odd = jax.random.normal(
        k_w3, (num_edges, num_irreps * u_odd), dtype=jnp.float32)
    out3 = jax.block_until_ready(
        make_weighted_channels(edge_attr, weights_odd, irrep_dims, u_odd, alpha))
    ref3 = _ref_individual(edge_attr, weights_odd, irrep_dims, u_odd, alpha)
    assert out3.shape == (num_edges, u_odd, dim)
    assert np.allclose(np.asarray(out3), ref3, atol=1e-5, rtol=1e-5), "padded-UD mismatch"

    print("KERNEL_OK")
</pallas_src>

<mosaic_0001>
module attributes {stable_mosaic.version = 11 : i64} {
  func.func @_wc_kernel_tile_concat(%arg0: i32, %arg1: memref<24x16xf32, #tpu.memory_space<vmem>>, %arg2: memref<24x32xf32, #tpu.memory_space<vmem>>, %arg3: memref<32x128xf32, #tpu.memory_space<vmem>>, %arg4: memref<24x128xf32, #tpu.memory_space<vmem>>) attributes {dimension_semantics = [#tpu.dimension_semantics<parallel>], iteration_bounds = array<i64: 1>, scalar_prefetch = 0 : i64, scratch_operands = 0 : i64, tpu.core_type = #tpu.core_type<tc>, window_params = [{transform_indices = @transform_0, window_bounds = array<i64: 24, 16>}, {transform_indices = @transform_1, window_bounds = array<i64: 24, 32>}, {pipeline_mode = #tpu.pipeline_mode<synchronous>, transform_indices = @transform_2, window_bounds = array<i64: 32, 128>}, {transform_indices = @transform_3, window_bounds = array<i64: 24, 128>}]} {
    %c0 = arith.constant 0 : index
    %c0_0 = arith.constant 0 : index
    %0 = vector.load %arg2[%c0, %c0_0] : memref<24x32xf32, #tpu.memory_space<vmem>>, vector<24x32xf32>
    %c0_1 = arith.constant 0 : index
    %c0_2 = arith.constant 0 : index
    %1 = vector.load %arg3[%c0_1, %c0_2] : memref<32x128xf32, #tpu.memory_space<vmem>>, vector<32x128xf32>
    %cst = arith.constant dense<0.000000e+00> : vector<24x128xf32>
    %2 = tpu.matmul %0, %1, %cst {dimension_numbers = #tpu.dot_dimension_numbers<[1], [0], [0], [1], [0, 0, 1, 1], [], []>, precision = #tpu.contract_precision<fp32>} : vector<24x32xf32>, vector<32x128xf32>, vector<24x128xf32> -> vector<24x128xf32>
    %c0_3 = arith.constant 0 : index
    %c0_4 = arith.constant 0 : index
    %3 = vector.load %arg1[%c0_3, %c0_4] : memref<24x16xf32, #tpu.memory_space<vmem>>, vector<24x16xf32>
    %4 = tpu.concatenate %3, %3, %3, %3, %3, %3, %3, %3 in 1 : vector<24x16xf32>, vector<24x16xf32>, vector<24x16xf32>, vector<24x16xf32>, vector<24x16xf32>, vector<24x16xf32>, vector<24x16xf32>, vector<24x16xf32> -> vector<24x128xf32>
    %5 = arith.mulf %4, %2 : vector<24x128xf32>
    %cst_5 = arith.constant 5.000000e-01 : f32
    %6 = vector.broadcast %cst_5 : f32 to vector<24x128xf32>
    %7 = arith.mulf %5, %6 : vector<24x128xf32>
    %c0_6 = arith.constant 0 : index
    %c0_7 = arith.constant 0 : index
    %8 = vector.load %arg4[%c0_6, %c0_7] : memref<24x128xf32, #tpu.memory_space<vmem>>, vector<24x128xf32>
    tpu.vector_store %arg4[%c0_6, %c0_7], %7 {strides = array<i32>} : memref<24x128xf32, #tpu.memory_space<vmem>>, vector<24x128xf32>,
    return
  }
  func.func @transform_0(%arg0: i32) -> (i32, i32) {
    %c0_i32 = arith.constant 0 : i32
    %c0_i32_0 = arith.constant 0 : i32
    return %arg0, %c0_i32 : i32, i32
  }
  func.func @transform_1(%arg0: i32) -> (i32, i32) {
    %c0_i32 = arith.constant 0 : i32
    %c0_i32_0 = arith.constant 0 : i32
    return %arg0, %c0_i32 : i32, i32
  }
  func.func @transform_2(%arg0: i32) -> (i32, i32) {
    %c0_i32 = arith.constant 0 : i32
    %c0_i32_0 = arith.constant 0 : i32
    %c0_i32_1 = arith.constant 0 : i32
    return %c0_i32, %c0_i32_0 : i32, i32
  }
  func.func @transform_3(%arg0: i32) -> (i32, i32) {
    %c0_i32 = arith.constant 0 : i32
    %c0_i32_0 = arith.constant 0 : i32
    return %arg0, %c0_i32 : i32, i32
  }
}

module attributes {stable_mosaic.version = 11 : i64} {
  func.func @_wc_kernel_tile_mxu(%arg0: i32, %arg1: memref<24x16xf32, #tpu.memory_space<vmem>>, %arg2: memref<24x32xf32, #tpu.memory_space<vmem>>, %arg3: memref<32x128xf32, #tpu.memory_space<vmem>>, %arg4: memref<16x128xf32, #tpu.memory_space<vmem>>, %arg5: memref<24x128xf32, #tpu.memory_space<vmem>>) attributes {dimension_semantics = [#tpu.dimension_semantics<parallel>], iteration_bounds = array<i64: 1>, scalar_prefetch = 0 : i64, scratch_operands = 0 : i64, tpu.core_type = #tpu.core_type<tc>, window_params = [{transform_indices = @transform_0, window_bounds = array<i64: 24, 16>}, {transform_indices = @transform_1, window_bounds = array<i64: 24, 32>}, {pipeline_mode = #tpu.pipeline_mode<synchronous>, transform_indices = @transform_2, window_bounds = array<i64: 32, 128>}, {pipeline_mode = #tpu.pipeline_mode<synchronous>, transform_indices = @transform_3, window_bounds = array<i64: 16, 128>}, {transform_indices = @transform_4, window_bounds = array<i64: 24, 128>}]} {
    %c0 = arith.constant 0 : index
    %c0_0 = arith.constant 0 : index
    %0 = vector.load %arg2[%c0, %c0_0] : memref<24x32xf32, #tpu.memory_space<vmem>>, vector<24x32xf32>
    %c0_1 = arith.constant 0 : index
    %c0_2 = arith.constant 0 : index
    %1 = vector.load %arg3[%c0_1, %c0_2] : memref<32x128xf32, #tpu.memory_space<vmem>>, vector<32x128xf32>
    %cst = arith.constant dense<0.000000e+00> : vector<24x128xf32>
    %2 = tpu.matmul %0, %1, %cst {dimension_numbers = #tpu.dot_dimension_numbers<[1], [0], [0], [1], [0, 0, 1, 1], [], []>, precision = #tpu.contract_precision<fp32>} : vector<24x32xf32>, vector<32x128xf32>, vector<24x128xf32> -> vector<24x128xf32>
    %c0_3 = arith.constant 0 : index
    %c0_4 = arith.constant 0 : index
    %3 = vector.load %arg1[%c0_3, %c0_4] : memref<24x16xf32, #tpu.memory_space<vmem>>, vector<24x16xf32>
    %c0_5 = arith.constant 0 : index
    %c0_6 = arith.constant 0 : index
    %4 = vector.load %arg4[%c0_5, %c0_6] : memref<16x128xf32, #tpu.memory_space<vmem>>, vector<16x128xf32>
    %cst_7 = arith.constant dense<0.000000e+00> : vector<24x128xf32>
    %5 = tpu.matmul %3, %4, %cst_7 {dimension_numbers = #tpu.dot_dimension_numbers<[1], [0], [0], [1], [0, 0, 1, 1], [], []>, precision = #tpu.contract_precision<fp32>} : vector<24x16xf32>, vector<16x128xf32>, vector<24x128xf32> -> vector<24x128xf32>
    %6 = arith.mulf %5, %2 : vector<24x128xf32>
    %cst_8 = arith.constant 5.000000e-01 : f32
    %7 = vector.broadcast %cst_8 : f32 to vector<24x128xf32>
    %8 = arith.mulf %6, %7 : vector<24x128xf32>
    %c0_9 = arith.constant 0 : index
    %c0_10 = arith.constant 0 : index
    %9 = vector.load %arg5[%c0_9, %c0_10] : memref<24x128xf32, #tpu.memory_space<vmem>>, vector<24x128xf32>
    tpu.vector_store %arg5[%c0_9, %c0_10], %8 {strides = array<i32>} : memref<24x128xf32, #tpu.memory_space<vmem>>, vector<24x128xf32>,
    return
  }
  func.func @transform_0(%arg0: i32) -> (i32, i32) {
    %c0_i32 = arith.constant 0 : i32
    %c0_i32_0 = arith.constant 0 : i32
    return %arg0, %c0_i32 : i32, i32
  }
  func.func @transform_1(%arg0: i32) -> (i32, i32) {
    %c0_i32 = arith.constant 0 : i32
    %c0_i32_0 = arith.constant 0 : i32
    return %arg0, %c0_i32 : i32, i32
  }
  func.func @transform_2(%arg0: i32) -> (i32, i32) {
    %c0_i32 = arith.constant 0 : i32
    %c0_i32_0 = arith.constant 0 : i32
    %c0_i32_1 = arith.constant 0 : i32
    return %c0_i32, %c0_i32_0 : i32, i32
  }
  func.func @transform_3(%arg0: i32) -> (i32, i32) {
    %c0_i32 = arith.constant 0 : i32
    %c0_i32_0 = arith.constant 0 : i32
    %c0_i32_1 = arith.constant 0 : i32
    return %c0_i32, %c0_i32_0 : i32, i32
  }
  func.func @transform_4(%arg0: i32) -> (i32, i32) {
    %c0_i32 = arith.constant 0 : i32
    %c0_i32_0 = arith.constant 0 : i32
    return %arg0, %c0_i32 : i32, i32
  }
}

</mosaic_0001>

<bundles_post_ra>
// kernel: tpu_custom_call.1
= control target key start
LH: loop header
LB: loop body
LE: loop exit
PB: predicated region body
PF: predicated region fallthrough
CT: control target
= control target key end

     0   :  { %8 = vsyncpa [#allocation3], 0  ;;  %s698_s0 = inlined_call_operand.vmem [shape: f32[20,16], index: 0, kind: input, shape index: {}]   ;;  %s699_s1 = inlined_call_operand.hbm [shape: f32[20,32], index: 1, kind: input, shape index: {}]   ;;  %s700_s2 = inlined_call_operand.vmem [shape: f32[32,128], index: 2, kind: input, shape index: {}]   ;;  %s701_s3 = inlined_call_operand.hbm [shape: f32[20,128], index: 3, kind: output, shape index: {}]  }
   0x1   :  { %9 = vsyncpa [#allocation4], 0  ;;  %s16_s14 = sshll.u32 %s699_s1, 4  ;;  %s490_s15 = smov [#allocation2]   ;;  %s17_s14 = int_to_ptr.hbm [resolvable:$true] %s16_s14 }
   0x2   :  { %s18_s16 = sshll.u32 %s490_s15, 4  ;;  %s491_s17 = smov 128   ;;  %s19_s16 = int_to_ptr.vmem [resolvable:$true] %s18_s16 }
   0x3   :  { %s492_s18 = smov 8  }
   0x4   :  { %24 = dma.hbm_to_vmem [thread:$0]  %s17_s14, 384, %s19_s16, [#allocation3], %s491_s17, %s491_s17, %s492_s18  }
   0x5   :  { %486 = dma.done.wait [#allocation3], 384  }
   0x6   :  { %487 = vsyncadd [#allocation3], 4294966912  ;;  %vm38_vm0 = vcmask 261120   ;;  %v530_v0 = vld [vmem:[%s698_s0 + $0x10] sm:$0xff]  ;;  %v535_v1 = vld [vmem:[%s698_s0] sm:$0xff]  ;;  %s493_s24 = smov 16  }
   0x7   :  { %v37_v2 = vld [vmem:[%s700_s2 + $0x18] sm:$0xff]  ;;  %305 = vrot.lane.b32.xlu1 %v530_v0, %s493_s24  ;;  %301 = vrot.lane.b32.xlu0 %v535_v1, %s493_s24  ;;  %v549_v4 = vld [vmem:[%s698_s0 + $0x8] sm:$0xff]  ;;  %s494_s29 = smov 32   ;;  %v33_v11 = vld [vmem:[#allocation2 + $0x10] sm:$0xff]  ;;  %s495_s0 = smov 48   ;;  %vm364_vm1 = vcmask 130048  }
   0x8   :  { %v544_v3 = vand.u32 4294901760, %v37_v2  ;;  %v36_v5 = vld [vmem:[%s700_s2 + $0x10] sm:$0xff]  ;;  %v32_v6 = vld [vmem:[#allocation2 + $0x8] sm:$0xff]  ;;  %312 = vrot.lane.b32.xlu2 %v549_v4, %s494_s29  ;;  %v34_v9 = vld [vmem:[%s700_s2] sm:$0xff]  ;;  %v46_v18 = vsel %vm38_vm0, %v33_v11, 0  ;;  %s497_s7 = smov 80  }
   0x9   :  { %v556_v7 = vand.u32 4294901760, %v36_v5  ;;  %v35_v8 = vld [vmem:[%s700_s2 + $0x8] sm:$0xff]  ;;  %v43_v10 = vsel %vm38_vm0, %v32_v6, 0  ;;  %v568_v13 = vand.u32 4294901760, %v34_v9  ;;  %v31_v16 = vld [vmem:[#allocation2] sm:$0xff]  ;;  %v591_v25 = vand.u32 4294901760, %v46_v18 }
   0xa   :  { %419 = vmatpush.msra.mxu2 %v544_v3  ;;  %v566_v12 = vand.u32 4294901760, %v35_v8  ;;  %v106_v14 = vsub.f32 %v37_v2, %v544_v3  ;;  %v571_v15 = vand.u32 4294901760, %v43_v10  ;;  %61 = vmatpush.msra.mxu0 %v544_v3  ;;  %v40_v19 = vsel %vm38_vm0, %v31_v16, 0  ;;  %s496_s2 = smov 64   ;;  %s498_s8 = smov 96  }
   0xb   :  { %v575_v17 = vsub.f32 %v36_v5, %v556_v7  ;;  %v587_v23 = vsub.f32 %v34_v9, %v568_v13  ;;  %v593_v26 = vand.u32 4294901760, %v40_v19  ;;  %v602_v32 = vsub.f32 %v46_v18, %v591_v25  ;;  %s499_s9 = smov 112   ;;  %s500_s10 = smov [#allocation5]  }
   0xc   :  { %420 = vmatpush.msra.mxu2 %v556_v7  ;;  %v107_v20 = vand.u32 4294901760, %v106_v14  ;;  %v581_v21 = vsub.f32 %v43_v10, %v571_v15  ;;  %v584_v22 = vsub.f32 %v35_v8, %v566_v12  ;;  %63 = vmatpush.msra.mxu0 %v556_v7  ;;  %vm371_vm2 = vcmask 392192   ;;  %s404_s11 = sshll.u32 %s500_s10, 4  ;;  %s406_s14 = sshll.u32 %s701_s3, 4  ;;  %s405_s11 = int_to_ptr.vmem [resolvable:$true] %s404_s11  ;;  %s407_s14 = int_to_ptr.hbm [resolvable:$true] %s406_s14 }
   0xd   :  { %v113_v24 = vand.u32 4294901760, %v575_v17  ;;  %v125_v30 = vand.u32 4294901760, %v587_v23  ;;  %v605_v33 = vsub.f32 %v40_v19, %v593_v26  ;;  %v86_v39 = vand.u32 4294901760, %v602_v32 }
   0xe   :  { %421 = vmatpush.msra.mxu2 %v566_v12  ;;  %v108_v27 = vsub.f32 %v106_v14, %v107_v20  ;;  %v78_v28 = vand.u32 4294901760, %v581_v21  ;;  %v119_v29 = vand.u32 4294901760, %v584_v22  ;;  %65 = vmatpush.msra.mxu0 %v566_v12  ;;  %vm375_vm3 = vcmask 523264  }
   0xf   :  { %v114_v31 = vsub.f32 %v575_v17, %v113_v24  ;;  %310 = vrot.lane.b32.xlu1 %v535_v1, %s494_s29  ;;  %303 = vrot.lane.b32.xlu0 %v549_v4, %s493_s24  ;;  %v126_v38 = vsub.f32 %v587_v23, %v125_v30  ;;  %v70_v40 = vand.u32 4294901760, %v605_v33  ;;  %v87_v43 = vsub.f32 %v602_v32, %v86_v39 }
  0x10   :  { %v109_v34 = vand.u32 4294901760, %v108_v27  ;;  %v79_v35 = vsub.f32 %v581_v21, %v78_v28  ;;  %v120_v36 = vsub.f32 %v584_v22, %v119_v29  ;;  %422 = vmatpush.msra.mxu2 %v568_v13  ;;  %314 = vrot.lane.b32.xlu2 %v530_v0, %s494_s29  ;;  %vm379_vm4 = vcmask 654336  }
  0x11   :  { %v115_v37 = vand.u32 4294901760, %v114_v31  ;;  %67 = vmatpush.msra.mxu0 %v568_v13  ;;  %v71_v44 = vsub.f32 %v605_v33, %v70_v40  ;;  %v127_v45 = vand.u32 4294901760, %v126_v38  ;;  %v88_v46 = vand.u32 4294901760, %v87_v43 }
  0x12   :  { %423 = vmatpush.msra.mxu3 %v109_v34  ;;  %v80_v41 = vand.u32 4294901760, %v79_v35  ;;  %v121_v42 = vand.u32 4294901760, %v120_v36  ;;  %156 = vmatpush.msrb.mxu2 %v106_v14  ;;  %vm383_vm5 = vcmask 785408   ;;  %vm387_vm6 = vcmask 916480  }
  0x13   :  { %110 = vmatpush.msra.mxu1 %v109_v34  ;;  %236 = vmatpush.msrb.mxu0 %v107_v20  ;;  %v72_v47 = vand.u32 4294901760, %v71_v44 }
  0x14   :  { %81 = vmatmul.f32.vlgmr.msra.gmra.mxu2 %v80_v41  ;;  %424 = vmatpush.msra.mxu3 %v115_v37 }
  0x15   :  { %159 = vmatpush.msrb.mxu2 %v575_v17  ;;  %116 = vmatpush.msra.mxu1 %v115_v37 }
  0x16   :  { %425 = vmatpush.msra.mxu3 %v121_v42  ;;  %73 = vmatmul.f32.vlgmr.msra.gmra.mxu0 %v72_v47 }
  0x17   :  { %162 = vmatpush.msrb.mxu2 %v584_v22  ;;  %122 = vmatpush.msra.mxu1 %v121_v42 }
  0x18   :  { %321 = vrot.lane.b32.xlu1 %v549_v4, %s495_s0  ;;  %319 = vrot.lane.b32.xlu0 %v535_v1, %s495_s0 }
  0x19   :  { %426 = vmatpush.msra.mxu3 %v127_v45  ;;  %323 = vrot.lane.b32.xlu2 %v530_v0, %s495_s0 }
  0x1a   :  { %134 = vmatmul.f32.vlgmr.msra.gmra.mxu3 %v571_v15  ;;  %165 = vmatpush.msrb.mxu2 %v587_v23 }
  0x1b   :  { %195 = vmatpush.msrb.mxu3 %v544_v3  ;;  %128 = vmatpush.msra.mxu1 %v127_v45 }
  0x1c   :  { %89 = vmatmul.f32.gmra.mxu2 %v88_v46  ;;  %130 = vmatmul.f32.vlgmr.msra.gmra.mxu1 %v593_v26 }
  0x1d   :  { %197 = vmatpush.msrb.mxu3 %v556_v7  ;;  %240 = vmatpush.msrb.mxu0 %v113_v24 }
  0x1e   :  { %275 = vmatpush.msrb.mxu1 %v544_v3 }
  0x1f   :  { %199 = vmatpush.msrb.mxu3 %v566_v12  ;;  %244 = vmatpush.msrb.mxu0 %v119_v29 }
  0x20   :  { %330 = vrot.lane.b32.xlu1 %v549_v4, %s496_s2  ;;  %328 = vrot.lane.b32.xlu0 %v535_v1, %s496_s2 }
  0x21   :  { %332 = vrot.lane.b32.xlu2 %v530_v0, %s496_s2  ;;  %201 = vmatpush.msrb.mxu3 %v568_v13 }
  0x22   :  { %138 = vmatmul.f32.gmra.mxu3 %v591_v25  ;;  %277 = vmatpush.msrb.mxu1 %v556_v7 }
  0x23   :  { %248 = vmatpush.msrb.mxu0 %v125_v30 }
  0x24   :  { %168 = vmatmul.f32.vlgmr.msrb.gmra.mxu2 %v605_v33  ;;  %279 = vmatpush.msrb.mxu1 %v566_v12 }
  0x25   :  { %250 = vmatmul.f32.vlgmr.msrb.gmra.mxu0 %v593_v26 }
  0x26   :  { %281 = vmatpush.msrb.mxu1 %v568_v13 }
  0x27   :  { %283 = vmatmul.f32.vlgmr.msrb.gmra.mxu1 %v593_v26 }
  0x28   :  { %339 = vrot.lane.b32.xlu1 %v549_v4, %s497_s7  ;;  %337 = vrot.lane.b32.xlu0 %v535_v1, %s497_s7 }
  0x29   :  { %341 = vrot.lane.b32.xlu2 %v530_v0, %s497_s7 }
  0x2a   :  { %205 = vmatmul.f32.vlgmr.msrb.gmra.mxu3 %v70_v40 }
  0x2c   :  { %173 = vmatmul.f32.gmra.mxu2 %v581_v21 }
  0x2d   :  { %254 = vmatmul.f32.gmra.mxu0 %v571_v15 }
  0x2f   :  { %287 = vmatmul.f32.gmra.mxu1 %v571_v15 }
  0x30   :  { %348 = vrot.lane.b32.xlu1 %v549_v4, %s498_s8  ;;  %346 = vrot.lane.b32.xlu0 %v535_v1, %s498_s8 }
  0x31   :  { %350 = vrot.lane.b32.xlu2 %v530_v0, %s498_s8 }
  0x32   :  { %211 = vmatmul.f32.gmra.mxu3 %v78_v28 }
  0x34   :  { %178 = vmatmul.f32.gmra.mxu2 %v602_v32 }
  0x35   :  { %258 = vmatmul.f32.gmra.mxu0 %v591_v25 }
  0x37   :  { %291 = vmatmul.f32.gmra.mxu1 %v591_v25 }
  0x38   :  { %357 = vrot.lane.b32.xlu1 %v549_v4, %s499_s9  ;;  %355 = vrot.lane.b32.xlu0 %v535_v1, %s499_s9 }
  0x39   :  { %359 = vrot.lane.b32.xlu2 %v530_v0, %s499_s9 }
  0x3a   :  { %217 = vmatmul.f32.gmra.mxu3 %v86_v39 }
  0x62   :  { %v313_v51 = vpop.permute.xlu2 %312 }
  0x6a   :  { %v315_v54 = vpop.permute.xlu2 %314 }
  0x73   :  { %v324_v58 = vpop.permute.xlu2 %323 }
  0x79   :  { %v302_v48 = vpop.permute.xlu0 %301  ;;  %v306_v49 = vpop.permute.xlu1 %305 }
  0x7a   :  { %v365_v8 = vsel %vm364_vm1, %v535_v1, %v302_v48  ;;  %v367_v24 = vsel %vm364_vm1, %v530_v0, %v306_v49 }
  0x7b   :  { %v333_v2 = vpop.permute.xlu2 %332  ;;  %v370_v31 = vsel %vm38_vm0, %v367_v24, %v315_v54 }
  0x7c   :  { %v374_v39 = vsel %vm371_vm2, %v370_v31, %v324_v58 }
  0x7d   :  { %v378_v45 = vsel %vm375_vm3, %v374_v39, %v333_v2 }
  0x81   :  { %v304_v50 = vpop.permute.xlu0 %303  ;;  %v311_v52 = vpop.permute.xlu1 %310 }
  0x82   :  { %v368_v12 = vsel %vm38_vm0, %v365_v8, %v311_v52  ;;  %v366_v20 = vsel %vm364_vm1, %v549_v4, %v304_v50 }
  0x83   :  { %v342_v14 = vpop.permute.xlu2 %341  ;;  %v369_v26 = vsel %vm38_vm0, %v366_v20, %v313_v51 }
  0x84   :  { %v382_v52 = vsel %vm379_vm4, %v378_v45, %v342_v14 }
  0x8a   :  { %v320_v53 = vpop.permute.xlu0 %319  ;;  %v322_v55 = vpop.permute.xlu1 %321 }
  0x8b   :  { %v372_v16 = vsel %vm371_vm2, %v368_v12, %v320_v53  ;;  %v373_v34 = vsel %vm371_vm2, %v369_v26, %v322_v55  ;;  %v351_v36 = vpop.permute.xlu2 %350 }
  0x8c   :  { %v386_v58 = vsel %vm383_vm5, %v382_v52, %v351_v36 }
  0x92   :  { %v329_v56 = vpop.permute.xlu0 %328  ;;  %v331_v59 = vpop.permute.xlu1 %330 }
  0x93   :  { %v74_v63 = vpop.f32.mrf.mxu0  ;;  %v376_v1 = vsel %vm375_vm3, %v372_v16, %v329_v56  ;;  %v377_v40 = vsel %vm375_vm3, %v373_v34, %v331_v59  ;;  %v360_v59 = vpop.permute.xlu2 %359 }
  0x97   :  { %v82_v57 = vpop.f32.mrf.mxu2 }
  0x99   :  { %v131_v3 = vpop.f32.mrf.mxu1 }
  0x9a   :  { %v338_v60 = vpop.permute.xlu0 %337  ;;  %v340_v5 = vpop.permute.xlu1 %339  ;;  %v132_v10 = vadd.f32 %v131_v3, %v74_v63 }
  0x9b   :  { %v380_v25 = vsel %vm379_vm4, %v376_v1, %v338_v60  ;;  %v381_v43 = vsel %vm379_vm4, %v377_v40, %v340_v5 }
  0x9d   :  { %v135_v61 = vpop.f32.mrf.mxu3 }
  0x9e   :  { %v136_v27 = vadd.f32 %v135_v61, %v82_v57 }
  0x9f   :  { %v90_v62 = vpop.f32.mrf.mxu2 }
  0xa2   :  { %v347_v7 = vpop.permute.xlu0 %346  ;;  %v251_v11 = vpop.f32.mrf.mxu0 }
  0xa3   :  { %v349_v18 = vpop.permute.xlu1 %348  ;;  %v384_v28 = vsel %vm383_vm5, %v380_v25, %v347_v7 }
  0xa4   :  { %v284_v13 = vpop.f32.mrf.mxu1  ;;  %v385_v46 = vsel %vm383_vm5, %v381_v43, %v349_v18 }
  0xa5   :  { %v139_v6 = vpop.f32.mrf.mxu3 }
  0xa6   :  { %v140_v47 = vadd.f32 %v139_v6, %v90_v62  ;;  %v390_v62 = vsel %vm387_vm6, %v386_v58, %v360_v59 }
  0xa7   :  { %v169_v9 = vpop.f32.mrf.mxu2 }
  0xa8   :  { %v170_v15 = vadd.f32 %v169_v9, %v132_v10 }
  0xaa   :  { %v356_v22 = vpop.permute.xlu0 %355  ;;  %v255_v30 = vpop.f32.mrf.mxu0 }
  0xab   :  { %v388_v4 = vsel %vm387_vm6, %v384_v28, %v356_v22  ;;  %v358_v41 = vpop.permute.xlu1 %357 }
  0xac   :  { %v288_v35 = vpop.f32.mrf.mxu1  ;;  %v389_v49 = vsel %vm387_vm6, %v385_v46, %v358_v41 }
  0xad   :  { %v206_v17 = vpop.f32.mrf.mxu3 }
  0xae   :  { %v207_v19 = vadd.f32 %v206_v17, %v170_v15 }
  0xaf   :  { %v174_v21 = vpop.f32.mrf.mxu2 }
  0xb0   :  { %v252_v23 = vadd.f32 %v251_v11, %v207_v19  ;;  %v175_v32 = vadd.f32 %v174_v21, %v136_v27 }
  0xb2   :  { %v285_v29 = vadd.f32 %v284_v13, %v252_v23  ;;  %v259_v54 = vpop.f32.mrf.mxu0 }
  0xb4   :  { %v391_v33 = vmul.f32 %v388_v4, %v285_v29  ;;  %v292_v57 = vpop.f32.mrf.mxu1 }
  0xb5   :  { %v212_v0 = vpop.f32.mrf.mxu3 }
  0xb6   :  { %v394_v37 = vmul.f32 0.5, %v391_v33  ;;  %v213_v38 = vadd.f32 %v212_v0, %v175_v32 }
  0xb7   :  { %v179_v44 = vpop.f32.mrf.mxu2 }
  0xb8   :  { %397 = vst [vmem:[#allocation5] sm:$0xff] %v394_v37  ;;  %v256_v42 = vadd.f32 %v255_v30, %v213_v38  ;;  %v180_v50 = vadd.f32 %v179_v44, %v140_v47 }
  0xba   :  { %v289_v48 = vadd.f32 %v288_v35, %v256_v42 }
  0xbc   :  { %v392_v51 = vmul.f32 %v389_v49, %v289_v48 }
  0xbd   :  { %v218_v53 = vpop.f32.mrf.mxu3 }
  0xbe   :  { %v395_v55 = vmul.f32 0.5, %v392_v51  ;;  %v219_v56 = vadd.f32 %v218_v53, %v180_v50 }
  0xc0   :  { %398 = vst [vmem:[#allocation5 + $0x8] sm:$0xff] %v395_v55  ;;  %v260_v60 = vadd.f32 %v259_v54, %v219_v56 }
  0xc2   :  { %v293_v61 = vadd.f32 %v292_v57, %v260_v60 }
  0xc4   :  { %v393_v63 = vmul.f32 %v390_v62, %v293_v61 }
  0xc6   :  { %v396_v2 = vmul.f32 0.5, %v393_v63 }
  0xc8   :  { %399 = vst [vmem:[#allocation5 + $0x10] sm:$0xff] %v396_v2 }
  0xc9   :  { %412 = dma.vmem_to_hbm [thread:$0]  %s405_s11, 384, %s407_s14, [#allocation4], %s491_s17, %s491_s17, %s492_s18  }
  0xca   :  { %488 = dma.done.wait [#allocation4], 384  }
  0xcb   :  { %489 = vsyncadd [#allocation4], 4294966912 }
  0xcc   :  { %417 = vsyncpa [#allocation3], 1 }
  0xcd   :  { %418 = vsyncpa [#allocation4], 1 }

// kernel: tpu_custom_call.1
= control target key start
LH: loop header
LB: loop body
LE: loop exit
PB: predicated region body
PF: predicated region fallthrough
CT: control target
= control target key end

     0   :  { %9 = vsyncpa [#allocation3], 0  ;;  %s810_s0 = inlined_call_operand.vmem [shape: f32[20,16], index: 0, kind: input, shape index: {}]   ;;  %s811_s1 = inlined_call_operand.hbm [shape: f32[20,32], index: 1, kind: input, shape index: {}]   ;;  %s812_s2 = inlined_call_operand.vmem [shape: f32[32,128], index: 2, kind: input, shape index: {}]   ;;  %s813_s3 = inlined_call_operand.hbm [shape: f32[16,128], index: 3, kind: input, shape index: {}]   ;;  %s814_s4 = inlined_call_operand.hbm [shape: f32[20,128], index: 4, kind: output, shape index: {}]  }
   0x1   :  { %10 = vsyncpa [#allocation6], 0 }
   0x2   :  { %11 = vsyncpa [#allocation4], 0  ;;  %s18_s17 = sshll.u32 %s811_s1, 4  ;;  %s662_s18 = smov [#allocation2]   ;;  %s19_s17 = int_to_ptr.hbm [resolvable:$true] %s18_s17 }
   0x3   :  { %s20_s19 = sshll.u32 %s662_s18, 4  ;;  %s33_s22 = sshll.u32 %s813_s3, 4  ;;  %s21_s19 = int_to_ptr.vmem [resolvable:$true] %s20_s19  ;;  %s34_s22 = int_to_ptr.hbm [resolvable:$true] %s33_s22 }
   0x4   :  { %s663_s23 = smov 128   ;;  %s664_s24 = smov 8  }
   0x5   :  { %26 = dma.hbm_to_vmem [thread:$0]  %s19_s17, 384, %s21_s19, [#allocation3], %s663_s23, %s663_s23, %s664_s24  }
   0x6   :  { %s665_s25 = smov [#allocation5]  }
   0x7   :  { %s35_s26 = sshll.u32 %s665_s25, 4  ;;  %s36_s26 = int_to_ptr.vmem [resolvable:$true] %s35_s26 }
   0x8   :  { %41 = dma.hbm_to_vmem [thread:$0]  %s34_s22, 256, %s36_s26, [#allocation6], %s663_s23, %s663_s23, %s664_s24  }
   0x9   :  { %656 = dma.done.wait [#allocation3], 384  }
   0xa   :  { %657 = vsyncadd [#allocation3], 4294966912 }
   0xb   :  { %658 = dma.done.wait [#allocation6], 256  }
   0xc   :  { %659 = vsyncadd [#allocation6], 4294967040  ;;  %vm57_vm0 = vcmask 261120   ;;  %v56_v0 = vld [vmem:[%s812_s2 + $0x18] sm:$0xff]  ;;  %v55_v1 = vld [vmem:[%s812_s2 + $0x10] sm:$0xff]  ;;  %vm319_vm1 = vcmask 130048  }
   0xd   :  { %v54_v2 = vld [vmem:[%s812_s2 + $0x8] sm:$0xff]  ;;  %v713_v3 = vand.u32 4294901760, %v56_v0  ;;  %v715_v4 = vand.u32 4294901760, %v55_v1  ;;  %v53_v6 = vld [vmem:[%s812_s2] sm:$0xff]  ;;  %v317_v13 = vld [vmem:[#allocation5] sm:$0xff]  ;;  %s565_s15 = sshll.u32 %s814_s4, 4  ;;  %s566_s15 = int_to_ptr.hbm [resolvable:$true] %s565_s15 }
   0xe   :  { %v717_v5 = vand.u32 4294901760, %v54_v2  ;;  %v50_v7 = vld [vmem:[#allocation2] sm:$0xff]  ;;  %v722_v9 = vand.u32 4294901760, %v53_v6  ;;  %v51_v12 = vld [vmem:[#allocation2 + $0x8] sm:$0xff]  ;;  %v52_v18 = vld [vmem:[#allocation2 + $0x10] sm:$0xff]  ;;  %v743_v22 = vand.u32 4294901760, %v317_v13 }
   0xf   :  { %v318_v8 = vld [vmem:[#allocation5 + $0x8] sm:$0xff]  ;;  %v59_v10 = vsel %vm57_vm0, %v50_v7, 0  ;;  %80 = vmatpush.msra.mxu0 %v713_v3  ;;  %v125_v14 = vsub.f32 %v56_v0, %v713_v3  ;;  %214 = vmatpush.msra.mxu3 %v713_v3  ;;  %v131_v15 = vsub.f32 %v55_v1, %v715_v4  ;;  %v62_v21 = vsel %vm57_vm0, %v51_v12, 0  ;;  %v315_v58 = vld [vmem:[%s810_s0 + $0x8] sm:$0xff]  ;;  %v316_v1 = vld [vmem:[%s810_s0 + $0x10] sm:$0xff] }
  0x10   :  { %v725_v11 = vand.u32 4294901760, %v318_v8  ;;  %v732_v16 = vsub.f32 %v54_v2, %v717_v5  ;;  %v734_v17 = vand.u32 4294901760, %v59_v10  ;;  %v737_v19 = vsub.f32 %v53_v6, %v722_v9  ;;  %v314_v44 = vld [vmem:[%s810_s0] sm:$0xff]  ;;  %s666_s0 = smov [#allocation7]  }
  0x11   :  { %82 = vmatpush.msra.mxu0 %v715_v4  ;;  %175 = vmatpush.msra.mxu2 %v125_v14  ;;  %v126_v23 = vand.u32 4294901760, %v125_v14  ;;  %v132_v25 = vand.u32 4294901760, %v131_v15  ;;  %v751_v29 = vand.u32 4294901760, %v62_v21  ;;  %v65_v30 = vsel %vm57_vm0, %v52_v18, 0  ;;  %s563_s12 = sshll.u32 %s666_s0, 4  ;;  %s564_s12 = int_to_ptr.vmem [resolvable:$true] %s563_s12 }
  0x12   :  { %v740_v20 = vsub.f32 %v318_v8, %v725_v11  ;;  %v88_v24 = vsub.f32 %v59_v10, %v734_v17  ;;  %v138_v26 = vand.u32 4294901760, %v732_v16  ;;  %216 = vmatpush.msra.mxu3 %v715_v4  ;;  %v144_v28 = vand.u32 4294901760, %v737_v19 }
  0x13   :  { %84 = vmatpush.msra.mxu0 %v717_v5  ;;  %178 = vmatpush.msra.mxu2 %v131_v15  ;;  %v127_v31 = vsub.f32 %v125_v14, %v126_v23  ;;  %v133_v33 = vsub.f32 %v131_v15, %v132_v25  ;;  %v96_v37 = vsub.f32 %v62_v21, %v751_v29  ;;  %v764_v41 = vand.u32 4294901760, %v65_v30 }
  0x14   :  { %v388_v27 = vand.u32 4294901760, %v740_v20  ;;  %v89_v32 = vand.u32 4294901760, %v88_v24  ;;  %v139_v34 = vsub.f32 %v732_v16, %v138_v26  ;;  %218 = vmatpush.msra.mxu3 %v717_v5  ;;  %v145_v36 = vsub.f32 %v737_v19, %v144_v28 }
  0x15   :  { %86 = vmatpush.msra.mxu0 %v722_v9  ;;  %v128_v38 = vand.u32 4294901760, %v127_v31  ;;  %181 = vmatpush.msra.mxu2 %v732_v16  ;;  %v134_v40 = vand.u32 4294901760, %v133_v33  ;;  %v97_v43 = vand.u32 4294901760, %v96_v37  ;;  %v393_v47 = vsub.f32 %v317_v13, %v743_v22 }
  0x16   :  { %v389_v35 = vsub.f32 %v740_v20, %v388_v27  ;;  %v90_v39 = vsub.f32 %v88_v24, %v89_v32  ;;  %220 = vmatpush.msra.mxu3 %v722_v9  ;;  %v140_v46 = vand.u32 4294901760, %v139_v34  ;;  %v146_v48 = vand.u32 4294901760, %v145_v36 }
  0x17   :  { %255 = vmatpush.msrb.mxu0 %v126_v23  ;;  %129 = vmatpush.msra.mxu1 %v128_v38  ;;  %v98_v49 = vsub.f32 %v96_v37, %v97_v43  ;;  %v104_v50 = vsub.f32 %v65_v30, %v764_v41  ;;  %v394_v51 = vand.u32 4294901760, %v393_v47  ;;  %v321_v52 = vsel %vm319_vm1, %v314_v44, 0 }
  0x18   :  { %v390_v42 = vand.u32 4294901760, %v389_v35  ;;  %v91_v45 = vand.u32 4294901760, %v90_v39  ;;  %184 = vmatpush.msra.mxu2 %v737_v19  ;;  %224 = vmatmul.f32.vlgmr.msra.gmra.mxu3 %v89_v32  ;;  %v347_v54 = vand.u32 4294901760, %v321_v52  ;;  %v324_v61 = vsel %vm319_vm1, %v315_v58, 0 }
  0x19   :  { %187 = vmatmul.f32.vlgmr.msra.gmra.mxu2 %v88_v24  ;;  %135 = vmatpush.msra.mxu1 %v134_v40  ;;  %v395_v53 = vsub.f32 %v393_v47, %v394_v51  ;;  %v99_v55 = vand.u32 4294901760, %v98_v49  ;;  %v105_v56 = vand.u32 4294901760, %v104_v50  ;;  %v355_v63 = vand.u32 4294901760, %v324_v61 }
  0x1a   :  { %92 = vmatmul.f32.vlgmr.msra.gmra.mxu0 %v91_v45  ;;  %344 = vmatpush.msrb.mxu2 %v725_v11  ;;  %v348_v59 = vsub.f32 %v321_v52, %v347_v54 }
  0x1b   :  { %391 = vmatpush.msrb.mxu3 %v390_v42  ;;  %141 = vmatpush.msra.mxu1 %v140_v46  ;;  %v396_v57 = vand.u32 4294901760, %v395_v53  ;;  %v106_v60 = vsub.f32 %v104_v50, %v105_v56 }
  0x1c   :  { %259 = vmatpush.msrb.mxu0 %v132_v25  ;;  %346 = vmatpush.msrb.mxu2 %v743_v22  ;;  %v349_v62 = vand.u32 4294901760, %v348_v59 }
  0x1d   :  { %147 = vmatpush.msra.mxu1 %v146_v48  ;;  %397 = vmatpush.msrb.mxu3 %v396_v57  ;;  %v107_v0 = vand.u32 4294901760, %v106_v60 }
  0x1e   :  { %263 = vmatpush.msrb.mxu0 %v138_v26  ;;  %149 = vmatmul.f32.vlgmr.msra.gmra.mxu1 %v734_v17  ;;  %v350_v2 = vsub.f32 %v348_v59, %v349_v62 }
  0x1f   :  { %501 = vmatpush.msra.mxu2 %v388_v27  ;;  %294 = vmatpush.msrb.mxu1 %v713_v3  ;;  %v356_v3 = vsub.f32 %v324_v61, %v355_v63 }
  0x20   :  { %230 = vmatmul.f32.gmra.mxu3 %v97_v43  ;;  %267 = vmatpush.msrb.mxu0 %v144_v28 }
  0x21   :  { %192 = vmatmul.f32.gmra.mxu2 %v96_v37  ;;  %296 = vmatpush.msrb.mxu1 %v715_v4  ;;  %v327_v4 = vsel %vm319_vm1, %v316_v1, 0  ;;  %v357_v6 = vand.u32 4294901760, %v356_v3 }
  0x22   :  { %100 = vmatmul.f32.gmra.mxu0 %v99_v55  ;;  %534 = vmatpush.msra.mxu3 %v725_v11  ;;  %v363_v7 = vand.u32 4294901760, %v327_v4 }
  0x23   :  { %298 = vmatpush.msrb.mxu1 %v717_v5  ;;  %427 = vmatpush.msra.mxu0 %v740_v20  ;;  %v351_v5 = vand.u32 4294901760, %v350_v2  ;;  %v358_v8 = vsub.f32 %v356_v3, %v357_v6 }
  0x24   :  { %505 = vmatpush.msra.mxu2 %v394_v51  ;;  %536 = vmatpush.msra.mxu3 %v743_v22 }
  0x25   :  { %300 = vmatpush.msrb.mxu1 %v722_v9  ;;  %430 = vmatpush.msra.mxu0 %v393_v47  ;;  %v364_v9 = vsub.f32 %v327_v4, %v363_v7  ;;  %v359_v10 = vand.u32 4294901760, %v358_v8 }
  0x26   :  { %153 = vmatmul.f32.gmra.mxu1 %v751_v29 }
  0x27   :  { %462 = vmatpush.msra.mxu1 %v725_v11  ;;  %v365_v11 = vand.u32 4294901760, %v364_v9 }
  0x28   :  { %236 = vmatmul.f32.gmra.mxu3 %v105_v56 }
  0x29   :  { %197 = vmatmul.f32.gmra.mxu2 %v104_v50  ;;  %464 = vmatpush.msra.mxu1 %v743_v22  ;;  %v366_v12 = vsub.f32 %v364_v9, %v365_v11 }
  0x2a   :  { %108 = vmatmul.f32.gmra.mxu0 %v107_v0 }
  0x2b   :  { %v367_v13 = vand.u32 4294901760, %v366_v12 }
  0x2e   :  { %157 = vmatmul.f32.gmra.mxu1 %v764_v41 }
  0x30   :  { %399 = vmatmul.f32.vlgmr.msrb.gmra.mxu3 %v347_v54 }
  0x31   :  { %352 = vmatmul.f32.vlgmr.msrb.gmra.mxu2 %v351_v5 }
  0x32   :  { %269 = vmatmul.f32.vlgmr.msrb.gmra.mxu0 %v734_v17 }
  0x36   :  { %302 = vmatmul.f32.vlgmr.msrb.gmra.mxu1 %v734_v17 }
  0x38   :  { %403 = vmatmul.f32.gmra.mxu3 %v355_v63 }
  0x39   :  { %360 = vmatmul.f32.gmra.mxu2 %v359_v10 }
  0x3a   :  { %273 = vmatmul.f32.gmra.mxu0 %v751_v29 }
  0x3e   :  { %306 = vmatmul.f32.gmra.mxu1 %v751_v29 }
  0x40   :  { %407 = vmatmul.f32.gmra.mxu3 %v363_v7 }
  0x41   :  { %368 = vmatmul.f32.gmra.mxu2 %v367_v13 }
  0x42   :  { %277 = vmatmul.f32.gmra.mxu0 %v764_v41 }
  0x46   :  { %310 = vmatmul.f32.gmra.mxu1 %v764_v41 }
  0x48   :  { %538 = vmatmul.f32.vlgmr.msra.gmra.mxu3 %v347_v54 }
  0x49   :  { %507 = vmatmul.f32.vlgmr.msra.gmra.mxu2 %v347_v54 }
  0x4a   :  { %433 = vmatmul.f32.vlgmr.msra.gmra.mxu0 %v348_v59 }
  0x4e   :  { %468 = vmatmul.f32.vlgmr.msra.gmra.mxu1 %v349_v62 }
  0x50   :  { %542 = vmatmul.f32.gmra.mxu3 %v355_v63 }
  0x51   :  { %511 = vmatmul.f32.gmra.mxu2 %v355_v63 }
  0x52   :  { %438 = vmatmul.f32.gmra.mxu0 %v356_v3 }
  0x56   :  { %474 = vmatmul.f32.gmra.mxu1 %v357_v6 }
  0x58   :  { %546 = vmatmul.f32.gmra.mxu3 %v363_v7 }
  0x59   :  { %515 = vmatmul.f32.gmra.mxu2 %v363_v7 }
  0x5a   :  { %443 = vmatmul.f32.gmra.mxu0 %v364_v9 }
  0x5e   :  { %480 = vmatmul.f32.gmra.mxu1 %v365_v11 }
  0x97   :  { %v93_v14 = vpop.f32.mrf.mxu0 }
  0x9b   :  { %v150_v15 = vpop.f32.mrf.mxu1  ;;  %v225_v17 = vpop.f32.mrf.mxu3 }
  0x9c   :  { %v188_v16 = vpop.f32.mrf.mxu2  ;;  %v151_v37 = vadd.f32 %v150_v15, %v93_v14 }
  0x9e   :  { %v189_v40 = vadd.f32 %v188_v16, %v151_v37 }
  0x9f   :  { %v101_v18 = vpop.f32.mrf.mxu0 }
  0xa0   :  { %v226_v45 = vadd.f32 %v225_v17, %v189_v40 }
  0xa3   :  { %v154_v19 = vpop.f32.mrf.mxu1  ;;  %v231_v21 = vpop.f32.mrf.mxu3 }
  0xa4   :  { %v193_v20 = vpop.f32.mrf.mxu2  ;;  %v155_v46 = vadd.f32 %v154_v19, %v101_v18 }
  0xa6   :  { %v194_v52 = vadd.f32 %v193_v20, %v155_v46 }
  0xa7   :  { %v109_v22 = vpop.f32.mrf.mxu0 }
  0xa8   :  { %v232_v60 = vadd.f32 %v231_v21, %v194_v52 }
  0xab   :  { %v158_v23 = vpop.f32.mrf.mxu1  ;;  %v237_v25 = vpop.f32.mrf.mxu3 }
  0xac   :  { %v198_v24 = vpop.f32.mrf.mxu2  ;;  %v159_v61 = vadd.f32 %v158_v23, %v109_v22 }
  0xae   :  { %v199_v4 = vadd.f32 %v198_v24, %v159_v61 }
  0xaf   :  { %v270_v26 = vpop.f32.mrf.mxu0 }
  0xb0   :  { %v271_v49 = vadd.f32 %v270_v26, %v226_v45  ;;  %v238_v12 = vadd.f32 %v237_v25, %v199_v4 }
  0xb3   :  { %v303_v27 = vpop.f32.mrf.mxu1  ;;  %v400_v29 = vpop.f32.mrf.mxu3 }
  0xb4   :  { %v353_v28 = vpop.f32.mrf.mxu2  ;;  %v304_v53 = vadd.f32 %v303_v27, %v271_v49 }
  0xb5   :  { %v401_v41 = vadd.f32 %v400_v29, %v353_v28 }
  0xb7   :  { %v274_v30 = vpop.f32.mrf.mxu0 }
  0xb8   :  { %v275_v1 = vadd.f32 %v274_v30, %v232_v60 }
  0xbb   :  { %v307_v31 = vpop.f32.mrf.mxu1  ;;  %v404_v33 = vpop.f32.mrf.mxu3 }
  0xbc   :  { %v361_v32 = vpop.f32.mrf.mxu2  ;;  %v308_v5 = vadd.f32 %v307_v31, %v275_v1 }
  0xbd   :  { %v405_v54 = vadd.f32 %v404_v33, %v361_v32 }
  0xbf   :  { %v278_v34 = vpop.f32.mrf.mxu0 }
  0xc0   :  { %v279_v16 = vadd.f32 %v278_v34, %v238_v12 }
  0xc3   :  { %v311_v35 = vpop.f32.mrf.mxu1  ;;  %v408_v38 = vpop.f32.mrf.mxu3 }
  0xc4   :  { %v369_v36 = vpop.f32.mrf.mxu2  ;;  %v312_v18 = vadd.f32 %v311_v35, %v279_v16 }
  0xc5   :  { %v409_v6 = vadd.f32 %v408_v38, %v369_v36 }
  0xc7   :  { %v434_v39 = vpop.f32.mrf.mxu0 }
  0xc8   :  { %v435_v42 = vadd.f32 %v434_v39, %v401_v41 }
  0xcb   :  { %v469_v43 = vpop.f32.mrf.mxu1  ;;  %v539_v48 = vpop.f32.mrf.mxu3 }
  0xcc   :  { %v508_v44 = vpop.f32.mrf.mxu2  ;;  %v470_v47 = vadd.f32 %v469_v43, %v435_v42 }
  0xce   :  { %v509_v51 = vadd.f32 %v508_v44, %v470_v47 }
  0xcf   :  { %v439_v50 = vpop.f32.mrf.mxu0 }
  0xd0   :  { %v540_v55 = vadd.f32 %v539_v48, %v509_v51  ;;  %v440_v56 = vadd.f32 %v439_v50, %v405_v54 }
  0xd2   :  { %v550_v57 = vmul.f32 %v540_v55, %v304_v53 }
  0xd3   :  { %v475_v58 = vpop.f32.mrf.mxu1  ;;  %v543_v0 = vpop.f32.mrf.mxu3 }
  0xd4   :  { %v512_v59 = vpop.f32.mrf.mxu2  ;;  %v553_v62 = vmul.f32 0.5, %v550_v57  ;;  %v476_v63 = vadd.f32 %v475_v58, %v440_v56 }
  0xd6   :  { %556 = vst [vmem:[#allocation7] sm:$0xff] %v553_v62  ;;  %v513_v2 = vadd.f32 %v512_v59, %v476_v63 }
  0xd7   :  { %v444_v3 = vpop.f32.mrf.mxu0 }
  0xd8   :  { %v544_v7 = vadd.f32 %v543_v0, %v513_v2  ;;  %v445_v8 = vadd.f32 %v444_v3, %v409_v6 }
  0xda   :  { %v551_v9 = vmul.f32 %v544_v7, %v308_v5 }
  0xdb   :  { %v481_v10 = vpop.f32.mrf.mxu1  ;;  %v547_v15 = vpop.f32.mrf.mxu3 }
  0xdc   :  { %v516_v11 = vpop.f32.mrf.mxu2  ;;  %v554_v13 = vmul.f32 0.5, %v551_v9  ;;  %v482_v14 = vadd.f32 %v481_v10, %v445_v8 }
  0xde   :  { %557 = vst [vmem:[#allocation7 + $0x8] sm:$0xff] %v554_v13  ;;  %v517_v17 = vadd.f32 %v516_v11, %v482_v14 }
  0xe0   :  { %v548_v19 = vadd.f32 %v547_v15, %v517_v17 }
  0xe2   :  { %v552_v20 = vmul.f32 %v548_v19, %v312_v18 }
  0xe4   :  { %v555_v21 = vmul.f32 0.5, %v552_v20 }
  0xe6   :  { %558 = vst [vmem:[#allocation7 + $0x10] sm:$0xff] %v555_v21 }
  0xe7   :  { %571 = dma.vmem_to_hbm [thread:$0]  %s564_s12, 384, %s566_s15, [#allocation4], %s663_s23, %s663_s23, %s664_s24  }
  0xe8   :  { %660 = dma.done.wait [#allocation4], 384  }
  0xe9   :  { %661 = vsyncadd [#allocation4], 4294966912 }
  0xea   :  { %576 = vsyncpa [#allocation3], 1 }
  0xeb   :  { %577 = vsyncpa [#allocation6], 1 }
  0xec   :  { %578 = vsyncpa [#allocation4], 1 }

</bundles_post_ra>
